<compile_context>
chip_gen: v6e
topology: v6e:2x2x1
jax: 0.10.0
libtpu: 0.0.40
codegen_flags: <defaults>
</compile_context>

<pallas_src>
import functools
import math

import jax
import jax.numpy as jnp
from jax.experimental import pallas as pl
from jax.experimental.pallas import tpu as pltpu


def _flash_attn_kernel(vl_ref, q_ref, k_ref, v_ref, o_ref,
                       m_sc, l_sc, acc_sc, *, tk, scale):
    b = pl.program_id(0)
    ki = pl.program_id(2)

    @pl.when(ki == 0)
    def _():
        m_sc[...] = jnp.full_like(m_sc, -jnp.inf)
        l_sc[...] = jnp.zeros_like(l_sc)
        acc_sc[...] = jnp.zeros_like(acc_sc)

    vl = vl_ref[b]            # scalar, prefetched into SMEM
    k_start = ki * tk

    # Skip key tiles that are entirely beyond valid_len (no MXU work).
    @pl.when(k_start < vl)
    def _():
        # Fold 1/sqrt(d) into Q (tq*D elements instead of the (tq, tk) scores),
        # keeping the matmul operands in the input dtype for full MXU rate.
        q = q_ref[...] * jnp.asarray(scale, q_ref.dtype)      # (tq, Dp)
        s = jax.lax.dot_general(
            q, k_ref[...],
            dimension_numbers=(((1,), (1,)), ((), ())),
            preferred_element_type=jnp.float32)                # (tq, tk) f32

        # masked softmax over keys: positions >= valid_len get -1e6
        col = k_start + jax.lax.broadcasted_iota(jnp.int32, s.shape, 1)
        s = jnp.where(col < vl, s, jnp.float32(-1e6))

        # online softmax update
        m_prev = m_sc[...]
        m_new = jnp.maximum(m_prev, jnp.max(s, axis=-1, keepdims=True))
        alpha = jnp.exp(m_prev - m_new)
        p = jnp.exp(s - m_new)
        l_sc[...] = alpha * l_sc[...] + jnp.sum(p, axis=-1, keepdims=True)
        acc_sc[...] = alpha * acc_sc[...] + jnp.dot(
            p.astype(v_ref.dtype), v_ref[...],
            preferred_element_type=jnp.float32)
        m_sc[...] = m_new

    @pl.when(ki == pl.num_programs(2) - 1)
    def _():
        # Deferred normalization: EUP approx reciprocal + one Newton step
        # (runs once per output tile; near-free, near-exact).
        l = l_sc[...]
        inv = pl.reciprocal(l, approx=True)
        inv = inv * (2.0 - l * inv)
        o_ref[...] = (acc_sc[...] * inv).astype(o_ref.dtype)


def _round_up(x, m):
    return (x + m - 1) // m * m


def dot_product_attention(queries, keys, values, valid_lens=None, *,
                          block_q=128, block_k=256):
    """queries (B,Tq,D), keys (B,Tk,D), values (B,Tk,Dv), valid_lens (B,) int."""
    B, Tq, D = queries.shape
    _, Tk, _ = keys.shape
    Dv = values.shape[-1]
    out_dtype = queries.dtype

    if valid_lens is None:
        valid_lens = jnp.full((B,), Tk, dtype=jnp.int32)
    valid_lens = valid_lens.astype(jnp.int32)

    # Lane-dense / MXU-friendly padded shapes (zero padding).
    Dp = max(_round_up(D, 128), 128)
    Dvp = max(_round_up(Dv, 128), 128)
    tq = min(block_q, _round_up(Tq, 8))
    tk = min(block_k, _round_up(Tk, 128))
    Tqp = _round_up(Tq, tq)
    Tkp = _round_up(Tk, tk)

    qp = jnp.zeros((B, Tqp, Dp), queries.dtype).at[:, :Tq, :D].set(queries)
    kp = jnp.zeros((B, Tkp, Dp), keys.dtype).at[:, :Tk, :D].set(keys)
    vp = jnp.zeros((B, Tkp, Dvp), values.dtype).at[:, :Tk, :Dv].set(values)

    grid = (B, Tqp // tq, Tkp // tk)
    kernel = functools.partial(_flash_attn_kernel, tk=tk,
                               scale=1.0 / math.sqrt(D))

    out = pl.pallas_call(
        kernel,
        out_shape=jax.ShapeDtypeStruct((B, Tqp, Dvp), out_dtype),
        grid_spec=pltpu.PrefetchScalarGridSpec(
            num_scalar_prefetch=1,           # valid_lens -> SMEM
            grid=grid,
            in_specs=[
                pl.BlockSpec((pl.Squeezed(), tq, Dp),
                             lambda b, qi, ki, vl: (b, qi, 0)),
                pl.BlockSpec((pl.Squeezed(), tk, Dp),
                             lambda b, qi, ki, vl: (b, ki, 0)),
                pl.BlockSpec((pl.Squeezed(), tk, Dvp),
                             lambda b, qi, ki, vl: (b, ki, 0)),
            ],
            out_specs=pl.BlockSpec((pl.Squeezed(), tq, Dvp),
                                   lambda b, qi, ki, vl: (b, qi, 0)),
            scratch_shapes=[
                pltpu.VMEM((tq, 1), jnp.float32),     # m (running max)
                pltpu.VMEM((tq, 1), jnp.float32),     # l (running denom)
                pltpu.VMEM((tq, Dvp), jnp.float32),   # acc (unnormalized out)
            ],
        ),
        compiler_params=pltpu.CompilerParams(
            dimension_semantics=("parallel", "parallel", "arbitrary")),
    )(valid_lens, qp, kp, vp)

    return out[:, :Tq, :Dv]


def _reference(queries, keys, values, valid_lens):
    d = queries.shape[-1]
    scores = jnp.einsum("bqd,bkd->bqk", queries, keys) / math.sqrt(d)
    mask = jnp.arange(keys.shape[1])[None, None, :] < valid_lens[:, None, None]
    scores = jnp.where(mask, scores, -1000000.0)
    w = jax.nn.softmax(scores, axis=-1)
    return jnp.einsum("bqk,bkv->bqv", w, values)


if __name__ == "__main__":
    key = jax.random.PRNGKey(0)

    # Shapes mirror the PyTorch script: B=2, Tq=1, Tk=10, D=2, Dv=4
    B, Tq, Tk, D, Dv = 2, 1, 10, 2, 4

    keys_in = jnp.ones((B, Tk, D), dtype=jnp.float32)
    queries = jax.random.normal(key, (B, Tq, D), dtype=jnp.float32)
    values = jnp.tile(
        jnp.arange(40, dtype=jnp.float32).reshape(1, Tk, Dv), (B, 1, 1))
    valid_lens = jnp.array([2, 6], dtype=jnp.int32)

    out = dot_product_attention(queries, keys_in, values, valid_lens)
    out = jax.block_until_ready(out)

    ref = _reference(queries, keys_in, values, valid_lens)
    assert out.shape == (B, Tq, Dv)
    assert out.dtype == queries.dtype
    assert jnp.allclose(out, ref, atol=1e-4, rtol=1e-4), (out, ref)

    print("KERNEL_OK")
</pallas_src>

<mosaic_0001>
module attributes {stable_mosaic.version = 11 : i64} {
  func.func @_flash_attn_kernel(%arg0: i32, %arg1: i32, %arg2: i32, %arg3: memref<2xi32, #tpu.memory_space<smem>>, %arg4: memref<1x8x128xf32, #tpu.memory_space<vmem>>, %arg5: memref<1x128x128xf32, #tpu.memory_space<vmem>>, %arg6: memref<1x128x128xf32, #tpu.memory_space<vmem>>, %arg7: memref<1x8x128xf32, #tpu.memory_space<vmem>>, %arg8: memref<8x1xf32, #tpu.memory_space<vmem>>, %arg9: memref<8x1xf32, #tpu.memory_space<vmem>>, %arg10: memref<8x128xf32, #tpu.memory_space<vmem>>) attributes {dimension_semantics = [#tpu.dimension_semantics<parallel>, #tpu.dimension_semantics<parallel>, #tpu.dimension_semantics<arbitrary>], iteration_bounds = array<i64: 2, 1, 1>, scalar_prefetch = 1 : i64, scratch_operands = 3 : i64, tpu.core_type = #tpu.core_type<tc>, window_params = [{transform_indices = @transform_0, window_bounds = array<i64: 1, 8, 128>}, {transform_indices = @transform_1, window_bounds = array<i64: 1, 128, 128>}, {transform_indices = @transform_2, window_bounds = array<i64: 1, 128, 128>}, {transform_indices = @transform_3, window_bounds = array<i64: 1, 8, 128>}]} {
    %c0_i32 = arith.constant 0 : i32
    %0 = arith.cmpi eq, %arg2, %c0_i32 : i32
    %1 = arith.extui %0 : i1 to i32
    %c0_i32_0 = arith.constant 0 : i32
    %2 = arith.cmpi ne, %1, %c0_i32_0 : i32
    scf.if %2 {
      %cst = arith.constant 0xFF800000 : f32
      %12 = vector.broadcast %cst : f32 to vector<8x1xf32>
      %c0 = arith.constant 0 : index
      %c0_4 = arith.constant 0 : index
      %13 = vector.load %arg8[%c0, %c0_4] : memref<8x1xf32, #tpu.memory_space<vmem>>, vector<8x1xf32>
      tpu.vector_store %arg8[%c0, %c0_4], %12 {strides = array<i32>} : memref<8x1xf32, #tpu.memory_space<vmem>>, vector<8x1xf32>,
      %cst_5 = arith.constant 0.000000e+00 : f32
      %14 = vector.broadcast %cst_5 : f32 to vector<8x1xf32>
      %c0_6 = arith.constant 0 : index
      %c0_7 = arith.constant 0 : index
      %15 = vector.load %arg9[%c0_6, %c0_7] : memref<8x1xf32, #tpu.memory_space<vmem>>, vector<8x1xf32>
      tpu.vector_store %arg9[%c0_6, %c0_7], %14 {strides = array<i32>} : memref<8x1xf32, #tpu.memory_space<vmem>>, vector<8x1xf32>,
      %cst_8 = arith.constant 0.000000e+00 : f32
      %16 = vector.broadcast %cst_8 : f32 to vector<8x128xf32>
      %c0_9 = arith.constant 0 : index
      %c0_10 = arith.constant 0 : index
      %17 = vector.load %arg10[%c0_9, %c0_10] : memref<8x128xf32, #tpu.memory_space<vmem>>, vector<8x128xf32>
      tpu.vector_store %arg10[%c0_9, %c0_10], %16 {strides = array<i32>} : memref<8x128xf32, #tpu.memory_space<vmem>>, vector<8x128xf32>,
    } else {
    }
    %3 = arith.index_cast %arg0 : i32 to index
    %4 = memref.load %arg3[%3] : memref<2xi32, #tpu.memory_space<smem>>
    %c128_i32 = arith.constant 128 : i32
    %5 = arith.muli %arg2, %c128_i32 : i32
    %6 = arith.cmpi slt, %5, %4 : i32
    %7 = arith.extui %6 : i1 to i32
    %c0_i32_1 = arith.constant 0 : i32
    %8 = arith.cmpi ne, %7, %c0_i32_1 : i32
    scf.if %8 {
      %c0 = arith.constant 0 : index
      %c0_4 = arith.constant 0 : index
      %c0_5 = arith.constant 0 : index
      %12 = vector.load %arg4[%c0, %c0_4, %c0_5] : memref<1x8x128xf32, #tpu.memory_space<vmem>>, vector<1x8x128xf32>
      %13 = vector.shape_cast %12 : vector<1x8x128xf32> to vector<8x128xf32>
      %cst = arith.constant 0.707106769 : f32
      %14 = vector.broadcast %cst : f32 to vector<8x128xf32>
      %15 = arith.mulf %13, %14 : vector<8x128xf32>
      %c0_6 = arith.constant 0 : index
      %c0_7 = arith.constant 0 : index
      %c0_8 = arith.constant 0 : index
      %16 = vector.load %arg5[%c0_6, %c0_7, %c0_8] : memref<1x128x128xf32, #tpu.memory_space<vmem>>, vector<1x128x128xf32>
      %17 = vector.shape_cast %16 : vector<1x128x128xf32> to vector<128x128xf32>
      %cst_9 = arith.constant dense<0.000000e+00> : vector<8x128xf32>
      %18 = tpu.matmul %15, %17, %cst_9 {dimension_numbers = #tpu.dot_dimension_numbers<[1], [1], [0], [0], [0, 0, 1, 0], [], []>} : vector<8x128xf32>, vector<128x128xf32>, vector<8x128xf32> -> vector<8x128xf32>
      %19 = tpu.iota {dimensions = array<i32: 1>} : vector<8x128xi32>
      %20 = vector.broadcast %5 : i32 to vector<8x128xi32>
      %21 = arith.addi %20, %19 : vector<8x128xi32>
      %22 = vector.broadcast %4 : i32 to vector<8x128xi32>
      %23 = arith.cmpi slt, %21, %22 : vector<8x128xi32>
      %cst_10 = arith.constant -1.000000e+06 : f32
      %24 = vector.broadcast %cst_10 : f32 to vector<8x128xf32>
      %25 = arith.select %23, %18, %24 : vector<8x128xi1>, vector<8x128xf32>
      %c0_11 = arith.constant 0 : index
      %c0_12 = arith.constant 0 : index
      %26 = vector.load %arg8[%c0_11, %c0_12] : memref<8x1xf32, #tpu.memory_space<vmem>>, vector<8x1xf32>
      %cst_13 = arith.constant dense<0xFF800000> : vector<8xf32>
      %27 = vector.multi_reduction <maximumf>, %25, %cst_13 [1] : vector<8x128xf32> to vector<8xf32>
      %28 = vector.shape_cast %27 : vector<8xf32> to vector<8x1xf32>
      %29 = arith.maximumf %26, %28 : vector<8x1xf32>
      %30 = arith.subf %26, %29 : vector<8x1xf32>
      %31 = math.exp %30 : vector<8x1xf32>
      %32 = vector.broadcast %29 : vector<8x1xf32> to vector<8x128xf32>
      %33 = arith.subf %25, %32 : vector<8x128xf32>
      %34 = math.exp %33 : vector<8x128xf32>
      %c0_14 = arith.constant 0 : index
      %c0_15 = arith.constant 0 : index
      %35 = vector.load %arg9[%c0_14, %c0_15] : memref<8x1xf32, #tpu.memory_space<vmem>>, vector<8x1xf32>
      %36 = arith.mulf %31, %35 : vector<8x1xf32>
      %cst_16 = arith.constant dense<0.000000e+00> : vector<8xf32>
      %37 = vector.multi_reduction <add>, %34, %cst_16 [1] : vector<8x128xf32> to vector<8xf32>
      %38 = vector.shape_cast %37 : vector<8xf32> to vector<8x1xf32>
      %39 = arith.addf %36, %38 : vector<8x1xf32>
      %c0_17 = arith.constant 0 : index
      %c0_18 = arith.constant 0 : index
      %40 = vector.load %arg9[%c0_17, %c0_18] : memref<8x1xf32, #tpu.memory_space<vmem>>, vector<8x1xf32>
      tpu.vector_store %arg9[%c0_17, %c0_18], %39 {strides = array<i32>} : memref<8x1xf32, #tpu.memory_space<vmem>>, vector<8x1xf32>,
      %c0_19 = arith.constant 0 : index
      %c0_20 = arith.constant 0 : index
      %41 = vector.load %arg10[%c0_19, %c0_20] : memref<8x128xf32, #tpu.memory_space<vmem>>, vector<8x128xf32>
      %42 = vector.broadcast %31 : vector<8x1xf32> to vector<8x128xf32>
      %43 = arith.mulf %42, %41 : vector<8x128xf32>
      %c0_21 = arith.constant 0 : index
      %c0_22 = arith.constant 0 : index
      %c0_23 = arith.constant 0 : index
      %44 = vector.load %arg6[%c0_21, %c0_22, %c0_23] : memref<1x128x128xf32, #tpu.memory_space<vmem>>, vector<1x128x128xf32>
      %45 = vector.shape_cast %44 : vector<1x128x128xf32> to vector<128x128xf32>
      %cst_24 = arith.constant dense<0.000000e+00> : vector<8x128xf32>
      %46 = tpu.matmul %34, %45, %cst_24 {dimension_numbers = #tpu.dot_dimension_numbers<[1], [0], [0], [1], [0, 0, 1, 1], [], []>} : vector<8x128xf32>, vector<128x128xf32>, vector<8x128xf32> -> vector<8x128xf32>
      %47 = arith.addf %43, %46 : vector<8x128xf32>
      %c0_25 = arith.constant 0 : index
      %c0_26 = arith.constant 0 : index
      %48 = vector.load %arg10[%c0_25, %c0_26] : memref<8x128xf32, #tpu.memory_space<vmem>>, vector<8x128xf32>
      tpu.vector_store %arg10[%c0_25, %c0_26], %47 {strides = array<i32>} : memref<8x128xf32, #tpu.memory_space<vmem>>, vector<8x128xf32>,
      %c0_27 = arith.constant 0 : index
      %c0_28 = arith.constant 0 : index
      %49 = vector.load %arg8[%c0_27, %c0_28] : memref<8x1xf32, #tpu.memory_space<vmem>>, vector<8x1xf32>
      tpu.vector_store %arg8[%c0_27, %c0_28], %29 {strides = array<i32>} : memref<8x1xf32, #tpu.memory_space<vmem>>, vector<8x1xf32>,
    } else {
    }
    %c0_i32_2 = arith.constant 0 : i32
    %9 = arith.cmpi eq, %arg2, %c0_i32_2 : i32
    %10 = arith.extui %9 : i1 to i32
    %c0_i32_3 = arith.constant 0 : i32
    %11 = arith.cmpi ne, %10, %c0_i32_3 : i32
    scf.if %11 {
      %c0 = arith.constant 0 : index
      %c0_4 = arith.constant 0 : index
      %12 = vector.load %arg9[%c0, %c0_4] : memref<8x1xf32, #tpu.memory_space<vmem>>, vector<8x1xf32>
      %13 = tpu.reciprocal %12 {approx = true} : vector<8x1xf32> -> vector<8x1xf32>
      %14 = arith.mulf %12, %13 : vector<8x1xf32>
      %cst = arith.constant 2.000000e+00 : f32
      %15 = vector.broadcast %cst : f32 to vector<8x1xf32>
      %16 = arith.subf %15, %14 : vector<8x1xf32>
      %17 = arith.mulf %13, %16 : vector<8x1xf32>
      %c0_5 = arith.constant 0 : index
      %c0_6 = arith.constant 0 : index
      %18 = vector.load %arg10[%c0_5, %c0_6] : memref<8x128xf32, #tpu.memory_space<vmem>>, vector<8x128xf32>
      %19 = vector.broadcast %17 : vector<8x1xf32> to vector<8x128xf32>
      %20 = arith.mulf %18, %19 : vector<8x128xf32>
      %c0_7 = arith.constant 0 : index
      %c0_8 = arith.constant 0 : index
      %c0_9 = arith.constant 0 : index
      %21 = vector.load %arg7[%c0_7, %c0_8, %c0_9] : memref<1x8x128xf32, #tpu.memory_space<vmem>>, vector<1x8x128xf32>
      %22 = vector.shape_cast %21 : vector<1x8x128xf32> to vector<8x128xf32>
      %23 = vector.shape_cast %20 : vector<8x128xf32> to vector<1x8x128xf32>
      tpu.vector_store %arg7[%c0_7, %c0_8, %c0_9], %23 {strides = array<i32>} : memref<1x8x128xf32, #tpu.memory_space<vmem>>, vector<1x8x128xf32>,
    } else {
    }
    return
  }
  func.func @transform_0(%arg0: i32, %arg1: i32, %arg2: i32, %arg3: memref<2xi32, #tpu.memory_space<smem>>) -> (i32, i32, i32) {
    %c0_i32 = arith.constant 0 : i32
    %c0_i32_0 = arith.constant 0 : i32
    return %arg0, %arg1, %c0_i32 : i32, i32, i32
  }
  func.func @transform_1(%arg0: i32, %arg1: i32, %arg2: i32, %arg3: memref<2xi32, #tpu.memory_space<smem>>) -> (i32, i32, i32) {
    %c0_i32 = arith.constant 0 : i32
    %c0_i32_0 = arith.constant 0 : i32
    return %arg0, %arg2, %c0_i32 : i32, i32, i32
  }
  func.func @transform_2(%arg0: i32, %arg1: i32, %arg2: i32, %arg3: memref<2xi32, #tpu.memory_space<smem>>) -> (i32, i32, i32) {
    %c0_i32 = arith.constant 0 : i32
    %c0_i32_0 = arith.constant 0 : i32
    return %arg0, %arg2, %c0_i32 : i32, i32, i32
  }
  func.func @transform_3(%arg0: i32, %arg1: i32, %arg2: i32, %arg3: memref<2xi32, #tpu.memory_space<smem>>) -> (i32, i32, i32) {
    %c0_i32 = arith.constant 0 : i32
    %c0_i32_0 = arith.constant 0 : i32
    return %arg0, %arg1, %c0_i32 : i32, i32, i32
  }
}

</mosaic_0001>

<bundles_post_ra>
// kernel: tpu_custom_call.1
= control target key start
LH: loop header
LB: loop body
LE: loop exit
PB: predicated region body
PF: predicated region fallthrough
CT: control target
= control target key end

     0   :  { %s1091_s15 = smov [#allocation6]   ;;  %s1413_s0 = inlined_call_operand.hbm [shape: s32[2], index: 0, kind: input, shape index: {}]   ;;  %s1414_s1 = inlined_call_operand.hbm [shape: f32[2,8,128], index: 1, kind: input, shape index: {}]   ;;  %s1415_s2 = inlined_call_operand.hbm [shape: f32[2,128,128], index: 2, kind: input, shape index: {}]   ;;  %s1416_s3 = inlined_call_operand.hbm [shape: f32[2,128,128], index: 3, kind: input, shape index: {}]   ;;  %s1417_s4 = inlined_call_operand.hbm [shape: f32[2,8,128], index: 4, kind: output, shape index: {}]  }
   0x1   :  { %1421 = sst [smem:[#allocation21_spill]] %s1415_s2 }
   0x2   :  { %10 = dma.hbm_to_smem %s1413_s0, 16, %s1091_s15, [#allocation5] }
   0x3   :  { %1053 = dma.done.wait [#allocation5], 16 }
   0x4   :  { %1054 = vsyncadd [#allocation5], 4294967280 }
   0x5   :  { %12 = sfence }
   0x6   :  { %13 = vsyncpa [#allocation8], 0 }
   0x7   :  { %15 = vsyncpa [#allocation8 + $0x1], 0 }
   0x8   :  { %16 = vsyncpa [#allocation11], 0 }
   0x9   :  { %18 = vsyncpa [#allocation11 + $0x1], 0 }
   0xa   :  { %19 = vsyncpa [#allocation9], 0 }
   0xb   :  { %21 = vsyncpa [#allocation9 + $0x1], 0  ;;  %s1132_s18 = smov 0   ;;  %s1134_s19 = smov 0  }
   0xc   :  { %s1136_s20 = smov 0   ;;  %s1138_s21 = smov 0  }
   0xd   :  { %s1140_s22 = smov 0   ;;  %s1142_s0 = smov 0  }
   0xe LB: > { %1422 = sst [smem:[#allocation18_spill]] %s1077_s20  ;;  %s1163_s23 = sadd.s32 4294967295, %s1089_s0   ;;  %s1089_s0 = sphi %s1142_s0, %s27_s0   ;;  %s1085_s22 = sphi %s1140_s22, %s1440_s22   ;;  %s1081_s21 = sphi %s1138_s21, %s1439_s21   ;;  %s1077_s20 = sphi %s1136_s20, %s1435_s20   ;;  %s1073_s19 = sphi %s1134_s19, %s1438_s19   ;;  %s1069_s18 = sphi %s1132_s18, %s1437_s18  }
   0xf   : > { %s693_s24 = sadd.s32 4294967294, %s1089_s0   ;;  %s46_s25 = sadd.s32 1, %s1085_s22 }
  0x10   : > { %s55_s26 = sadd.s32 1, %s1077_s20  ;;  %p48_p0 = scmp.ge.s32.totalorder %s46_s25, 2 }
  0x11   : > { %p62_p1 = scmp.ne.s32.totalorder %s1077_s20, %s1073_s19  ;;  %p63_p2 = scmp.eq.s32.totalorder %s1089_s0, 0 }
  0x12   : > { %p68_p3 = scmp.ne.s32.totalorder %s1073_s19, %s1069_s18  ;;  %s1442_s25 = smov (%p48_p0, %s46_s25), 0 }
  0x13   : > { %1423 = sst [smem:[#allocation19_spill]] %s1442_s25  ;;  %p1175_p4 = por %p63_p2, %p62_p1 }
  0x14   : > { %p69_p5 = scmp.eq.s32.totalorder %s1163_s23, 0  ;;  %s50_s28 = ssub.s32 %s1085_s22, %s1442_s25 }
  0x15   : > { %p150_p6 = scmp.eq.s32.totalorder %s1163_s23, 1  ;;  %p53_p7 = scmp.eq.s32.totalorder %s50_s28, 0 }
  0x16   : > { %p1183_p8 = por %p69_p5, %p68_p3  ;;  %p156_p10 = scmp.eq.s32.totalorder %s693_s24, 1 }
  0x17   : > { %p1187_p9 = por %p150_p6, %p62_p1  ;;  %p843_p13 = scmp.lt.s32.totalorder %s1089_s0, 2 }
  0x18   : > { %s1192_s5 = scalar_select %p53_p7, %s1077_s20, %s55_s26  }
  0x19   : > { %p1194_p11 = por %p156_p10, %p68_p3  ;;  %s1201_s7 = sand.u32 1, %s1077_s20  }
  0x1a   : > { %1427 = sst [smem:[#allocation20_spill]] %s1192_s5  ;;  %s195_s8 = sand.u32 1, %s1089_s0  }
  0x1b   : > { %s698_s9 = sshll.u32 %s1201_s7, 7  ;;  %p1207_p0 = pnand %p843_p13, %p1175_p4 }
  0x1c   : > { %s715_s11 = sshll.u32 %s1085_s22, 11  ;;  %s1430_s2 = sld [smem:[#allocation21_spill]] }
  0x1d   : > { %s199_s15 = scalar_lea.vmem [#allocation10], %s698_s9  ;;  %s1217_s17 = scalar_lea.sflag [#allocation11], %s195_s8 }
  0x1e   : > { %s208_s16 = sshll.u32 %s199_s15, 4  ;;  %p921_p1 = pneg %p1207_p0  ;;  %s209_s16 = int_to_ptr.vmem [resolvable:$true] %s208_s16 }
  0x1f   : > { %s932_s24 = scalar_lea.vmem %s209_s16, 2048  ;;  %s1092_s26 = smov [#allocation10]  }
  0x20   : > { %p933_p2 = scmp.ne.s32.totalorder %s209_s16, %s932_s24  ;;  %s937_s27 = sshll.u32 %s1092_s26, 4  ;;  %s938_s27 = int_to_ptr.vmem [resolvable:$false] %s937_s27 }
  0x21   : > { %s939_s28 = scalar_lea.vmem %s938_s27, 4096  ;;  %p940_p5 = scmp.lt.s32.totalorder %s209_s16, %s938_s27 }
  0x22   : > { %s207_s14 = scalar_lea.hbm %s1430_s2, %s715_s11  ;;  %p935_p3 = pnand %p933_p2, %p921_p1 }
  0x23   : > { %p941_p6 = scmp.lt.s32.totalorder %s939_s28, %s932_s24 }
  0x24   : > { %p936_p4 = pneg %p935_p3 }
  0x25   : > { %p942_p7 = por %p941_p6, %p940_p5 }
  0x27   : > { %p943_p10 = pnand %p942_p7, %p936_p4 }
  0x29   : > { %946 = shalt.err (!%p943_p10)
}
  0x2a   : > { %s1420_s12 = smov 128   ;;  %s1094_s8 = smov 8  }
  0x2b   : > { %835 = dma.hbm_to_vmem [thread:$0]  (!%p1207_p0), %s207_s14, 2048, %s209_s16, %s1217_s17, %s1420_s12, %s1420_s12, %s1094_s8  }
  0x2c   : > { %s1233_s24 = scalar_lea.hbm %s1416_s3, %s715_s11  ;;  %p704_p13 = scmp.ge.s32.totalorder %s1089_s0, 1 }
  0x2d   : > { %s222_s26 = scalar_lea.vmem [#allocation12], %s698_s9  ;;  %p239_p2 = scmp.lt.s32.totalorder %s1089_s0, 3 }
  0x2e   : > { %s231_s27 = sshll.u32 %s222_s26, 4  ;;  %s696_s2 = sshll.u32 %s1201_s7, 3  ;;  %s1248_s27 = int_to_ptr.vmem [resolvable:$true] %s231_s27 }
  0x2f   : > { %p1239_p3 = pnand %p704_p13, %p239_p2  ;;  %s697_s25 = sshll.u32 %s1085_s22, 7 }
  0x30   : > { %s186_s14 = scalar_lea.hbm %s1414_s1, %s697_s25  ;;  %s180_s11 = scalar_lea.vmem [#allocation7], %s696_s2 }
  0x31   : > { %s188_s16 = sshll.u32 %s180_s11, 4  ;;  %s177_s13 = scalar_lea.sflag [#allocation8], %s1201_s7  ;;  %s189_s16 = int_to_ptr.vmem [resolvable:$true] %s188_s16 }
  0x32   : > { %s960_s15 = scalar_lea.vmem %s189_s16, 128  ;;  %s1095_s9 = smov [#allocation7]  }
  0x33   : > { %p961_p4 = scmp.ne.s32.totalorder %s189_s16, %s960_s15  ;;  %s965_s26 = sshll.u32 %s1095_s9, 4  ;;  %s966_s26 = int_to_ptr.vmem [resolvable:$false] %s965_s26 }
  0x34   : > { %s967_s12 = scalar_lea.vmem %s966_s26, 256  ;;  %p968_p7 = scmp.lt.s32.totalorder %s189_s16, %s966_s26 }
  0x35   : > { %p963_p5 = pnand %p961_p4, %p921_p1  ;;  %p969_p10 = scmp.lt.s32.totalorder %s967_s12, %s960_s15 }
  0x37   : > { %p964_p6 = pneg %p963_p5  ;;  %p970_p13 = por %p969_p10, %p968_p7 }
  0x39   : > { %p971_p2 = pnand %p970_p13, %p964_p6 }
  0x3b   : > { %974 = shalt.err (!%p971_p2)
}
  0x3c   : > { %832 = dma.hbm_to_vmem [thread:$0]  (!%p1207_p0), %s186_s14, 128, %s189_s16, %s177_s13  }
  0x3d   : > { %s988_s2 = scalar_lea.vmem %s1248_s27, 2048  ;;  %s1096_s20 = smov [#allocation12]  }
  0x3e   : > { %p989_p12 = scmp.ne.s32.totalorder %s1248_s27, %s988_s2  ;;  %s993_s25 = sshll.u32 %s1096_s20, 4  ;;  %s994_s25 = int_to_ptr.vmem [resolvable:$false] %s993_s25 }
  0x3f   : > { %s995_s5 = scalar_lea.vmem %s994_s25, 4096  ;;  %p996_p7 = scmp.lt.s32.totalorder %s1248_s27, %s994_s25 }
  0x40   : > { %p991_p4 = pnand %p989_p12, %p921_p1  ;;  %p997_p6 = scmp.lt.s32.totalorder %s995_s5, %s988_s2 }
  0x42   : > { %p992_p5 = pneg %p991_p4  ;;  %p998_p10 = por %p997_p6, %p996_p7 }
  0x44   : > { %p999_p13 = pnand %p998_p10, %p992_p5 }
  0x46   : > { %1002 = shalt.err (!%p999_p13)
}
  0x47   : > { %s1432_s7 = smov 128   ;;  %243 = sbr.rel (%p1239_p3) target bundleno = 990 (0x3de), region = 32 }
  0x48   : > { %838 = dma.hbm_to_vmem [thread:$0]  (!%p1207_p0), %s1233_s24, 2048, %s1248_s27, %s1217_s17, %s1432_s7, %s1432_s7, %s1094_s8  }
  0x49   : > { %s1273_s12 = sand.u32 (!%p1239_p3), 1, %s1073_s19  }
  0x4a   : > { %s705_s14 = sshll.u32 (!%p1239_p3), %s1273_s12, 3  ;;  %s246_s11 = scalar_lea.sflag (!%p1239_p3), [#allocation8], %s1273_s12 }
  0x4b   : > { %s1277_s16 = scalar_lea.vmem (!%p1239_p3), [#allocation7], %s705_s14 }
  0x4c   : > { %1056 = dma.done.wait (%p1183_p8), %s246_s11, 128  }
  0x4d   : > { %1058 = vsyncadd (%p1183_p8), %s246_s11, 4294967168  ;;  %s254_s10 = sand.u32 1, %s1163_s23   ;;  %s706_s17 = sshll.u32 %s1273_s12, 7 }
  0x4e   : > { %s255_s8 = scalar_lea.sflag [#allocation11], %s254_s10  ;;  %s1285_s24 = scalar_lea.vmem [#allocation10], %s706_s17 }
  0x4f   : > { %1060 = dma.done.wait (%p1183_p8), %s255_s8, 4096  }
  0x50   : > { %1062 = vsyncadd (%p1183_p8), %s255_s8, 4294963200  ;;  %vm306_vm0 = vcmask 7168   ;;  %s1292_s27 = sld [smem:[#allocation6 + %s1081_s21]]  ;;  %v1097_v0 = vmov -inf   ;;  %v1098_v1 = vmov 0.0   ;;  %s1296_s23 = scalar_lea.vmem [#allocation12], %s706_s17 }
  0x51   : > { %307 = vst.msk [vmem:[#allocation2] sm:$0xff] %vm306_vm0, %v1097_v0  ;;  %308 = vst.msk [vmem:[#allocation3] sm:$0xff] %vm306_vm0, %v1098_v1  ;;  %s1298_s28 = scalar_lea.vmem [#allocation13], %s705_s14 }
  0x52   : > { %309 = vst [vmem:[#allocation4] sm:$0xff] %v1098_v1 }
  0x56   : > { %p710_p12 = scmp.le.s32.totalorder %s1292_s27, 0 }
  0x58   : > { %315 = sbr.rel (%p710_p12) target bundleno = 830 (0x33e), region = 52 }
  0x5d   : > { %v333_v2 = vld [vmem:[%s1285_s24 + $0x78] sm:$0xff]  ;;  %v1099_v3 = vmov 0.0   ;;  %vm1100_vm1 = vmmov 0   ;;  %v332_v4 = vld [vmem:[%s1285_s24 + $0x70] sm:$0xff]  ;;  %v331_v5 = vld [vmem:[%s1285_s24 + $0x68] sm:$0xff]  ;;  %v404_v21 = vlaneseq  ;;  %v408_v23 = vstv %s1292_s27 }
  0x5e   : > { %751 = vmatprep.subr.mxu0 %v1099_v3  ;;  %783 = vmatprep.mubr.msk.f32.mxu0 %vm1100_vm1, %v1099_v3  ;;  %v330_v6 = vld [vmem:[%s1285_s24 + $0x60] sm:$0xff]  ;;  %v329_v7 = vld [vmem:[%s1285_s24 + $0x58] sm:$0xff]  ;;  %v328_v8 = vld [vmem:[%s1285_s24 + $0x50] sm:$0xff]  ;;  %v1101_v27 = vmov 0  }
  0x5f   : > { %752 = vmatpush3.xpose.msra.mxu0 %v333_v2  ;;  %786 = vmatprep.subr.mxu1 %v1099_v3  ;;  %v327_v9 = vld [vmem:[%s1285_s24 + $0x48] sm:$0xff]  ;;  %v326_v10 = vld [vmem:[%s1285_s24 + $0x40] sm:$0xff]  ;;  %v325_v11 = vld [vmem:[%s1285_s24 + $0x38] sm:$0xff]  ;;  %v405_v22 = vand.u32 127, %v404_v21 }
  0x60   : > { %753 = vmatprep.subr.mxu0 %v1099_v3  ;;  %818 = vmatprep.mubr.msk.f32.mxu1 %vm1100_vm1, %v1099_v3  ;;  %v324_v12 = vld [vmem:[%s1285_s24 + $0x30] sm:$0xff]  ;;  %v323_v13 = vld [vmem:[%s1285_s24 + $0x28] sm:$0xff]  ;;  %v322_v14 = vld [vmem:[%s1285_s24 + $0x20] sm:$0xff] }
  0x61   : > { %v321_v15 = vld [vmem:[%s1285_s24 + $0x18] sm:$0xff]  ;;  %v320_v16 = vld [vmem:[%s1285_s24 + $0x10] sm:$0xff]  ;;  %v319_v17 = vld [vmem:[%s1285_s24 + $0x8] sm:$0xff]  ;;  %vm409_vm2 = vcmp.lt.s32.totalorder %v405_v22, %v408_v23  ;;  %902 = vset.pattern.permute.xlu0 %v1101_v27  ;;  %903 = vset.pattern.permute.xlu1 %v1101_v27 }
  0x62   : > { %v316_v18 = vld [vmem:[%s1277_s16] sm:$0xff]  ;;  %v318_v19 = vld [vmem:[%s1285_s24] sm:$0xff]  ;;  %v453_v30 = vld [vmem:[%s1296_s23 + $0x68] sm:$0xff] }
  0x63   : > { %754 = vmatpush3.xpose.msra.mxu0 %v332_v4  ;;  %v317_v20 = vmul.f32 0.70710677, %v316_v18  ;;  %v455_v28 = vld [vmem:[%s1296_s23 + $0x78] sm:$0xff]  ;;  %v454_v29 = vld [vmem:[%s1296_s23 + $0x70] sm:$0xff]  ;;  %v452_v31 = vld [vmem:[%s1296_s23 + $0x60] sm:$0xff] }
  0x64   : > { %755 = vmatprep.subr.mxu0 %v1099_v3  ;;  %787 = vmatpush3.msra.mxu1 %v455_v28  ;;  %v451_v32 = vld [vmem:[%s1296_s23 + $0x58] sm:$0xff]  ;;  %v450_v33 = vld [vmem:[%s1296_s23 + $0x50] sm:$0xff]  ;;  %v449_v34 = vld [vmem:[%s1296_s23 + $0x48] sm:$0xff] }
  0x65   : > { %788 = vmatprep.subr.mxu1 %v1099_v3  ;;  %v411_v35 = vld [vmem:[#allocation2] sm:$0xff]  ;;  %v448_v36 = vld [vmem:[%s1296_s23 + $0x40] sm:$0xff]  ;;  %v446_v41 = vld [vmem:[%s1296_s23 + $0x30] sm:$0xff] }
  0x66   : > { %789 = vmatpush3.msra.mxu1 %v454_v29  ;;  %v447_v39 = vld [vmem:[%s1296_s23 + $0x38] sm:$0xff]  ;;  %v445_v42 = vld [vmem:[%s1296_s23 + $0x28] sm:$0xff]  ;;  %v444_v43 = vld [vmem:[%s1296_s23 + $0x20] sm:$0xff] }
  0x67   : > { %756 = vmatpush3.xpose.msra.mxu0 %v331_v5  ;;  %790 = vmatprep.subr.mxu1 %v1099_v3  ;;  %v443_v44 = vld [vmem:[%s1296_s23 + $0x18] sm:$0xff]  ;;  %v442_v45 = vld [vmem:[%s1296_s23 + $0x10] sm:$0xff]  ;;  %v441_v46 = vld [vmem:[%s1296_s23 + $0x8] sm:$0xff] }
  0x68   : > { %757 = vmatprep.subr.mxu0 %v1099_v3  ;;  %791 = vmatpush3.msra.mxu1 %v453_v30  ;;  %v440_v47 = vld [vmem:[%s1296_s23] sm:$0xff]  ;;  %v433_v58 = vld [vmem:[#allocation4] sm:$0xff] }
  0x69   : > { %792 = vmatprep.subr.mxu1 %v1099_v3  ;;  %v426_v54 = vld [vmem:[#allocation3] sm:$0xff] }
  0x6a   : > { %793 = vmatpush3.msra.mxu1 %v452_v31 }
  0x6b   : > { %758 = vmatpush3.xpose.msra.mxu0 %v330_v6  ;;  %794 = vmatprep.subr.mxu1 %v1099_v3 }
  0x6c   : > { %759 = vmatprep.subr.mxu0 %v1099_v3  ;;  %795 = vmatpush3.msra.mxu1 %v451_v32 }
  0x6d   : > { %796 = vmatprep.subr.mxu1 %v1099_v3 }
  0x6e   : > { %797 = vmatpush3.msra.mxu1 %v450_v33 }
  0x6f   : > { %760 = vmatpush3.xpose.msra.mxu0 %v329_v7  ;;  %798 = vmatprep.subr.mxu1 %v1099_v3 }
  0x70   : > { %761 = vmatprep.subr.mxu0 %v1099_v3  ;;  %799 = vmatpush3.msra.mxu1 %v449_v34 }
  0x71   : > { %800 = vmatprep.subr.mxu1 %v1099_v3 }
  0x72   : > { %801 = vmatpush3.msra.mxu1 %v448_v36 }
  0x73   : > { %762 = vmatpush3.xpose.msra.mxu0 %v328_v8  ;;  %802 = vmatprep.subr.mxu1 %v1099_v3 }
  0x74   : > { %763 = vmatprep.subr.mxu0 %v1099_v3  ;;  %803 = vmatpush3.msra.mxu1 %v447_v39 }
  0x75   : > { %804 = vmatprep.subr.mxu1 %v1099_v3 }
  0x76   : > { %805 = vmatpush3.msra.mxu1 %v446_v41 }
  0x77   : > { %764 = vmatpush3.xpose.msra.mxu0 %v327_v9  ;;  %806 = vmatprep.subr.mxu1 %v1099_v3 }
  0x78   : > { %765 = vmatprep.subr.mxu0 %v1099_v3  ;;  %807 = vmatpush3.msra.mxu1 %v445_v42 }
  0x79   : > { %808 = vmatprep.subr.mxu1 %v1099_v3 }
  0x7a   : > { %809 = vmatpush3.msra.mxu1 %v444_v43 }
  0x7b   : > { %766 = vmatpush3.xpose.msra.mxu0 %v326_v10  ;;  %810 = vmatprep.subr.mxu1 %v1099_v3 }
  0x7c   : > { %767 = vmatprep.subr.mxu0 %v1099_v3  ;;  %811 = vmatpush3.msra.mxu1 %v443_v44 }
  0x7d   : > { %812 = vmatprep.subr.mxu1 %v1099_v3 }
  0x7e   : > { %813 = vmatpush3.msra.mxu1 %v442_v45 }
  0x7f   : > { %768 = vmatpush3.xpose.msra.mxu0 %v325_v11  ;;  %814 = vmatprep.subr.mxu1 %v1099_v3 }
  0x80   : > { %769 = vmatprep.subr.mxu0 %v1099_v3  ;;  %815 = vmatpush3.msra.mxu1 %v441_v46 }
  0x81   : > { %816 = vmatprep.subr.mxu1 %v1099_v3 }
  0x82   : > { %817 = vmatpush3.msra.mxu1 %v440_v47 }
  0x83   : > { %770 = vmatpush3.xpose.msra.mxu0 %v324_v12 }
  0x84   : > { %771 = vmatprep.subr.mxu0 %v1099_v3 }
  0x87   : > { %772 = vmatpush3.xpose.msra.mxu0 %v323_v13 }
  0x88   : > { %773 = vmatprep.subr.mxu0 %v1099_v3 }
  0x8b   : > { %774 = vmatpush3.xpose.msra.mxu0 %v322_v14 }
  0x8c   : > { %775 = vmatprep.subr.mxu0 %v1099_v3 }
  0x8f   : > { %776 = vmatpush3.xpose.msra.mxu0 %v321_v15 }
  0x90   : > { %777 = vmatprep.subr.mxu0 %v1099_v3 }
  0x93   : > { %778 = vmatpush3.xpose.msra.mxu0 %v320_v16 }
  0x94   : > { %779 = vmatprep.subr.mxu0 %v1099_v3 }
  0x97   : > { %780 = vmatpush3.xpose.msra.mxu0 %v319_v17 }
  0x98   : > { %781 = vmatprep.subr.mxu0 %v1099_v3 }
  0x9b   : > { %782 = vmatpush3.xpose.msra.mxu0 %v318_v19 }
  0x9e   : > { %784 = vmatmul.mubr.f32.vlgmr.msra.gmra.mxu0 %v317_v20 }
 0x15e   : > { %v400_v24 = vpop.f32.mrf.mxu0 }
 0x15f   : > { %v410_v25 = vsel %vm409_vm2, %v400_v24, -1000000.0 }
 0x160   : > { %412 = vmax.xlane.f32.xlu0 %v410_v25  ;;  %v785_v26 = vpop.f32.mrf.mxu0 }
 0x1e9   : > { %v413_v37 = vpop.xlane.xlu0 %412 }
 0x1ea   : > { %v414_v38 = vmax.f32 %v411_v35, %v413_v37 }
 0x1ec   : > { %v415_v40 = vsub.f32 %v411_v35, %v414_v38  ;;  %528 = vst.msk [vmem:[#allocation2] sm:$0xff] %vm306_vm0, %v414_v38  ;;  %420 = vperm.xlu0 %902, %v414_v38  }
 0x1ee   : > { %v416_v52 = vmul.f32 1.442695, %v415_v40 }
 0x267   : > { %v421_v48 = vpop.permute.xlu0 %420 }
 0x268   : > { %v423_v49 = vsub.f32 %v410_v25, %v421_v48 }
 0x26a   : > { %v424_v50 = vmul.f32 1.442695, %v423_v49 }
 0x26c   : > { %904 = vpow2.f32 %v424_v50 }
 0x26d   : > { %906 = vpow2.f32 %v416_v52 }
 0x279   : > { %v905_v51 = vpop.eup %904 }
 0x27a   : > { %428 = vadd.xlane.f32.xlu1 %v905_v51  ;;  %819 = vmatmul.mubr.f32.vlgmr.msra.gmra.mxu1 %v905_v51  ;;  %v907_v53 = vpop.eup %906 }
 0x27b   : > { %v427_v55 = vmul.f32 %v907_v53, %v426_v54 }
 0x28b   : > { %436 = vperm.xlu1 %903, %v907_v53  }
 0x303   : > { %v429_v56 = vpop.xlane.xlu1 %428 }
 0x304   : > { %v430_v57 = vadd.f32 %v429_v56, %v427_v55 }
 0x306   : > { %432 = vst.msk [vmem:[#allocation3] sm:$0xff] %vm306_vm0, %v430_v57 }
 0x307   : > { %v437_v59 = vpop.permute.xlu1 %436 }
 0x308   : > { %v439_v60 = vmul.f32 %v437_v59, %v433_v58 }
 0x33a   : > { %v522_v61 = vpop.f32.mrf.mxu1 }
 0x33b   : > { %v526_v62 = vadd.f32 %v522_v61, %v439_v60 }
 0x33c   : > { %v820_v63 = vpop.f32.mrf.mxu1 }
 0x33d   : > { %527 = vst [vmem:[#allocation4] sm:$0xff] %v526_v62 }
 0x33e PF: > { %v532_v0 = vld [vmem:[#allocation3] sm:$0xff]  ;;  %v1102_v1 = vmov 0   ;;  %s712_s29 = sshll.u32 %s1081_s21, 7  ;;  %s560_s13 = sshll.u32 %s1298_s28, 4  ;;  %s561_s13 = int_to_ptr.vmem [resolvable:$true] %s560_s13 }
 0x33f   : > { %908 = vset.pattern.permute.xlu0 %v1102_v1  ;;  %909 = vrcp.f32 %v532_v0  ;;  %s558_s26 = scalar_lea.hbm %s1417_s4, %s712_s29  ;;  %s546_s2 = scalar_lea.sflag [#allocation9], %s1273_s12 }
 0x340   : > { %s1003_s20 = scalar_lea.vmem %s561_s13, 128  ;;  %s1103_s25 = smov [#allocation13]  }
 0x341   : > { %p1004_p8 = scmp.ne.s32.totalorder %s561_s13, %s1003_s20  ;;  %s1007_s5 = sshll.u32 %s1103_s25, 4  ;;  %s1008_s5 = int_to_ptr.vmem [resolvable:$false] %s1007_s5 }
 0x342   : > { %s1009_s7 = scalar_lea.vmem %s1008_s5, 256  ;;  %p1010_p3 = scmp.lt.s32.totalorder %s561_s13, %s1008_s5 }
 0x343   : > { %p1005_p0 = pnand %p1004_p8, %p1187_p9  ;;  %p1011_p2 = scmp.lt.s32.totalorder %s1009_s7, %s1003_s20 }
 0x344   : > { %v537_v6 = vld [vmem:[#allocation4] sm:$0xff] }
 0x345   : > { %p1006_p1 = pneg %p1005_p0  ;;  %p1012_p4 = por %p1011_p2, %p1010_p3 }
 0x347   : > { %p1013_p5 = pnand %p1012_p4, %p1006_p1 }
 0x34c   : > { %v910_v2 = vpop.eup %909 }
 0x34d   : > { %v534_v3 = vmul.f32 %v910_v2, %v532_v0 }
 0x34f   : > { %v535_v4 = vsub.f32 2.0, %v534_v3 }
 0x351   : > { %v536_v5 = vmul.f32 %v910_v2, %v535_v4 }
 0x353   : > { %540 = vperm.xlu0 %908, %v536_v5  }
 0x3ce   : > { %v541_v7 = vpop.permute.xlu0 %540 }
 0x3cf   : > { %v543_v8 = vmul.f32 %v541_v7, %v537_v6 }
 0x3d1   : > { %544 = vst [vmem:[%s1298_s28] sm:$0xff] %v543_v8 }
 0x3d2   : > { %1016 = shalt.err (!%p1013_p5)
}
 0x3d3   : > { %s1017_s21 = scalar_lea.hbm %s558_s26, 128  ;;  %s1021_s11 = scalar_lea.hbm %s1417_s4, 256 }
 0x3d4   : > { %p1018_p7 = scmp.ne.s32.totalorder %s558_s26, %s1017_s21  ;;  %p1022_p13 = scmp.lt.s32.totalorder %s558_s26, %s1417_s4 }
 0x3d5   : > { %p1023_p12 = scmp.lt.s32.totalorder %s1021_s11, %s1017_s21 }
 0x3d6   : > { %p1019_p6 = pnand %p1018_p7, %p1187_p9 }
 0x3d7   : > { %p1024_p8 = por %p1023_p12, %p1022_p13 }
 0x3d8   : > { %p1020_p10 = pneg %p1019_p6 }
 0x3da   : > { %p1025_p0 = pnand %p1024_p8, %p1020_p10 }
 0x3dc   : > { %1028 = shalt.err (!%p1025_p0)
}
 0x3dd   : > { %827 = dma.vmem_to_hbm [thread:$0]  (%p1187_p9), %s561_s13, 128, %s558_s26, %s546_s2  }
 0x3de PF: > { %s572_s17 = sand.u32 1, %s1069_s18   ;;  %p1433_p1 = scmp.ge.s32.totalorder %s1089_s0, 2 }
 0x3df   : > { %s573_s8 = scalar_lea.sflag [#allocation9], %s572_s17 }
 0x3e0   : > { %p840_p3 = pnand %p1433_p1, %p1194_p11 }
 0x3e2   : > { %p841_p2 = pneg %p840_p3 }
 0x3e4   : > { %1064 = dma.done.wait (%p841_p2), %s573_s8, 128  }
 0x3e5   : > { %1066 = vsyncadd (%p841_p2), %s573_s8, 4294967168  ;;  %s27_s0 = sadd.s32 1, %s1089_s0   ;;  %s1434_s24 = sld [smem:[#allocation18_spill]] }
 0x3e6   : > { %p24_p4 = scmp.ge.s32.totalorder %s27_s0, 4   ;;  %s1435_s20 = sld [smem:[#allocation20_spill]] }
 0x3e7   : > { %s1436_s30 = sld [smem:[#allocation19_spill]]  ;;  %s1437_s18 = smov %s1073_s19 }
 0x3e8   : > { %s1439_s21 = smov %s1085_s22 }
 0x3e9   :  { %26 = sbr.rel (!%p24_p4) target bundleno = 14 (0xe), region = 113 }
 0x3eb   : > { %s1438_s19 = smov %s1434_s24 }
 0x3ed   : > { %s1440_s22 = smov %s1436_s30 }
 0x3ee   :  { %578 = vsyncpa [#allocation8], 1 }
 0x3ef   :  { %580 = vsyncpa [#allocation8 + $0x1], 1 }
 0x3f0   :  { %581 = vsyncpa [#allocation11], 1 }
 0x3f1   :  { %583 = vsyncpa [#allocation11 + $0x1], 1 }
 0x3f2   :  { %584 = vsyncpa [#allocation9], 1 }
 0x3f3   :  { %586 = vsyncpa [#allocation9 + $0x1], 1 }

</bundles_post_ra>
